<compile_context>
chip_gen: v5e
topology: v5e:2x2
jax: 0.10.0
libtpu: 0.0.40
codegen_flags: <defaults>
</compile_context>

<pallas_src>
import functools

import jax
import jax.numpy as jnp
from jax.experimental import pallas as pl
from jax.experimental.pallas import tpu as pltpu


def _round_up(x, m):
    return (x + m - 1) // m * m


_SQRT_HALF = 0.7071067811865476


def _patch_embed_kernel(x_ref, w_ref, p_ref, o_ref, *, e_true, apply_norm):
    # x_ref: (TILE_N, K_pad) bf16   w_ref: (K_pad, E_pad) bf16
    # p_ref: (8, E_pad) f32  [row0=bias, row1=gamma, row2=beta]
    # o_ref: (TILE_N, E_pad) out_dtype (bf16 by default)
    x = x_ref[...]
    w = w_ref[...]
    bias = p_ref[0:1, :]

    # Patch-projection matmul (the conv with kernel==stride==patch_size), f32 accumulate.
    y = jnp.dot(x, w, preferred_element_type=jnp.float32) + bias

    # Exact GELU (erf formulation, matches torch.nn.GELU default).
    y = 0.5 * y * (1.0 + jax.lax.erf(y * _SQRT_HALF))

    if apply_norm:
        gamma = p_ref[1:2, :]
        beta = p_ref[2:3, :]
        e_pad = y.shape[-1]
        inv_e = 1.0 / float(e_true)
        # Padded E lanes are exactly 0 here (zero-padded W/bias, GELU(0)==0), so the
        # raw sum already equals the sum over the true emb_dim — no pre-mask needed.
        mean = jnp.sum(y, axis=-1, keepdims=True) * inv_e
        cent = y - mean
        if e_pad != e_true:
            col = jax.lax.broadcasted_iota(jnp.int32, (1, e_pad), 1)
            cent = jnp.where(col < e_true, cent, 0.0)
        var = jnp.sum(cent * cent, axis=-1, keepdims=True) * inv_e
        y = cent * jax.lax.rsqrt(var + 1e-5)
        y = y * gamma + beta

    o_ref[...] = y.astype(o_ref.dtype)


def _fused_patch_embed(x, w_mat, params, *, e_true, apply_norm, tile_n,
                       out_dtype, vmem_limit, x_bufs):
    n_pad, k_pad = x.shape
    e_pad = w_mat.shape[1]
    assert n_pad % tile_n == 0
    grid = (n_pad // tile_n,)

    kernel = functools.partial(_patch_embed_kernel,
                               e_true=e_true, apply_norm=apply_norm)

    out_bytes = jnp.dtype(out_dtype).itemsize
    cost = pl.CostEstimate(
        flops=2 * n_pad * k_pad * e_pad,
        transcendentals=n_pad * e_pad,
        bytes_accessed=(n_pad * k_pad * 2 + k_pad * e_pad * 2
                        + 8 * e_pad * 4 + n_pad * e_pad * out_bytes),
    )

    return pl.pallas_call(
        kernel,
        out_shape=jax.ShapeDtypeStruct((n_pad, e_pad), out_dtype),
        grid_spec=pltpu.PrefetchScalarGridSpec(
            num_scalar_prefetch=0,
            grid=grid,
            in_specs=[
                # X row tiles stream; deeper pipeline when K is small (short MXU time).
                pl.BlockSpec((tile_n, k_pad), lambda i: (i, 0),
                             pipeline_mode=pl.Buffered(x_bufs)),
                # Resident operands (constant index_map): single-buffered to save VMEM.
                pl.BlockSpec((k_pad, e_pad), lambda i: (0, 0),
                             pipeline_mode=pl.Buffered(1)),
                pl.BlockSpec((8, e_pad), lambda i: (0, 0),
                             pipeline_mode=pl.Buffered(1)),
            ],
            out_specs=pl.BlockSpec((tile_n, e_pad), lambda i: (i, 0)),
        ),
        compiler_params=pltpu.CompilerParams(
            dimension_semantics=("parallel",),
            vmem_limit_bytes=int(vmem_limit),
        ),
        cost_estimate=cost,
    )(x, w_mat, params)


class ConvPatchEmbedding2dPallas:
    """JAX/Pallas port of ConvPatchEmbedding2d (Conv2d patchify + GELU [+ LayerNorm])."""

    def __init__(self, channels, patch_size, emb_dim, norm=True, key=None,
                 out_dtype=jnp.bfloat16):
        self.channels = channels
        self.patch_size = patch_size
        self.emb_dim = emb_dim
        self.norm = norm
        # bf16 output: halves the dominant HBM writeback (the module is mem-bound on
        # v6e/v7x). All matmul/GELU/LayerNorm math stays f32; downcast only at store.
        self.out_dtype = out_dtype

        if key is None:
            key = jax.random.PRNGKey(0)
        k_w, k_b = jax.random.split(key)

        fan_in = channels * patch_size * patch_size
        bound = 1.0 / jnp.sqrt(jnp.float32(fan_in))
        # Deterministic synthetic init (uniform, like PyTorch Conv2d default).
        self.conv_w = jax.random.uniform(
            k_w, (emb_dim, channels, patch_size, patch_size),
            minval=-bound, maxval=bound, dtype=jnp.float32)
        self.conv_b = jax.random.uniform(
            k_b, (emb_dim,), minval=-bound, maxval=bound, dtype=jnp.float32)
        # LayerNorm default init: weight=1, bias=0.
        self.ln_gamma = jnp.ones((emb_dim,), jnp.float32)
        self.ln_beta = jnp.zeros((emb_dim,), jnp.float32)

        # ---- precompute kernel-side parameters once ----
        self.k_dim = channels * patch_size * patch_size
        self.k_pad = _round_up(self.k_dim, 128)   # clean lanes for X, sublanes for bf16 W
        self.e_pad = _round_up(emb_dim, 128)      # lane-dense output columns

        w_mat = self.conv_w.reshape(emb_dim, self.k_dim).T           # (K, E), K=(c,kh,kw)
        self.w_mat = jnp.pad(
            w_mat, ((0, self.k_pad - self.k_dim), (0, self.e_pad - emb_dim))
        ).astype(jnp.bfloat16)

        # Pack bias/gamma/beta into one aligned (8, E_pad) f32 block (rows 0..2 used).
        params = jnp.zeros((8, self.e_pad), jnp.float32)
        params = params.at[0, :emb_dim].set(self.conv_b)
        params = params.at[1, :emb_dim].set(self.ln_gamma)
        params = params.at[2, :emb_dim].set(self.ln_beta)
        self.params = params

        # Generation-aware VMEM sizing.
        try:
            self._vmem_phys = int(pltpu.get_tpu_info().vmem_capacity_bytes)
        except Exception:
            self._vmem_phys = 64 * 1024 * 1024   # conservative (v7x per-TC)
        # ~28 MiB working-set target on v7x (64 MiB), up to 48 MiB on v5e/v6e (128 MiB).
        self._vmem_budget = min(int(self._vmem_phys * 0.45), 48 * 1024 * 1024)

        self._forward = jax.jit(self._forward_impl)

    # ---- tiling plan (all-static, evaluated at trace time) ----
    def _plan(self, n):
        out_b = jnp.dtype(self.out_dtype).itemsize
        resident = self.k_pad * self.e_pad * 2 + 8 * self.e_pad * 4  # bf16 W + param block

        def working_set(t):
            xb = 3 if self.k_pad <= 256 else 2
            return (resident + xb * t * self.k_pad * 2
                    + 2 * t * self.e_pad * out_b)

        n16 = _round_up(max(n, 16), 16)
        if n16 >= 256:
            cands = [c for c in (512, 384, 256, 128) if c <= n16] or [128]
        else:
            cands = [n16]
            half = n16 // 2
            if half >= 16 and half % 16 == 0:
                cands.append(half)          # allows an even grid on tiny inputs (v7x)

        best = None
        for t in cands:
            n_pad = _round_up(n16, t)
            fits = working_set(t) <= self._vmem_budget
            # prefer: fits VMEM, min row padding, even grid length (v7x 2 TCs), larger tile
            key = (not fits, n_pad - n16, (n_pad // t) % 2, -t)
            if best is None or key < best[0]:
                best = (key, t, n_pad)
        _, tile_n, n_pad = best

        # If nothing fits the budget, shrink tile_n (never clamp the limit below need).
        while working_set(tile_n) > self._vmem_budget and tile_n > 16:
            tile_n = max(16, (tile_n // 2) // 16 * 16)
            n_pad = _round_up(n16, tile_n)

        grid_len = n_pad // tile_n
        x_bufs = 3 if (self.k_pad <= 256 and grid_len >= 3) else 2

        work = working_set(tile_n)
        vmem_limit = max(2 * work, 16 * 1024 * 1024)
        vmem_limit = min(vmem_limit, int(self._vmem_phys * 0.75))
        return tile_n, n_pad, x_bufs, int(vmem_limit)

    def _forward_impl(self, image):
        # image: (B, C, H, W), NCHW like PyTorch.
        b, c, h, w = image.shape
        p = self.patch_size
        pad_h = (p - h % p) % p
        pad_w = (p - w % p) % p

        # bf16 for the unfold + MXU feed: halves HBM traffic of the host-side gather.
        img = image.astype(jnp.bfloat16)
        if pad_h or pad_w:
            img = jnp.pad(img, ((0, 0), (0, 0), (0, pad_h), (0, pad_w)))
        hp, wp = h + pad_h, w + pad_w
        nph, npw = hp // p, wp // p
        num_patches = nph * npw

        # TODO(synk): unfold still goes through HBM; in-kernel (C,P,Wp)-strip DMA gather
        # is future work. Under jit the cast/pad/transpose/reshape fuse into one producer.
        patches = img.reshape(b, c, nph, p, npw, p)
        patches = jnp.transpose(patches, (0, 2, 4, 1, 3, 5))
        x_patches = patches.reshape(b * num_patches, self.k_dim)

        n = b * num_patches
        tile_n, n_pad, x_bufs, vmem_limit = self._plan(n)

        # Pad rows to the tile grid and columns to K_pad (zeros -> matmul unchanged).
        x_patches = jnp.pad(
            x_patches, ((0, n_pad - n), (0, self.k_pad - self.k_dim)))

        out = _fused_patch_embed(
            x_patches, self.w_mat, self.params,
            e_true=self.emb_dim, apply_norm=self.norm, tile_n=tile_n,
            out_dtype=self.out_dtype, vmem_limit=vmem_limit, x_bufs=x_bufs)

        out = out[:n, :self.emb_dim]
        return out.reshape(b, num_patches, self.emb_dim)

    def __call__(self, image):
        return self._forward(image)


def _reference(module, image):
    """Pure-JAX reference with the same bf16 quantization of X/W/output as the kernel."""
    b, c, h, w = image.shape
    p = module.patch_size
    pad_h = (p - h % p) % p
    pad_w = (p - w % p) % p
    img = jnp.pad(image, ((0, 0), (0, 0), (0, pad_h), (0, pad_w)))
    hp, wp = h + pad_h, w + pad_w
    nph, npw = hp // p, wp // p

    patches = img.reshape(b, c, nph, p, npw, p)
    patches = jnp.transpose(patches, (0, 2, 4, 1, 3, 5))
    x = patches.reshape(b * nph * npw, c * p * p)
    x = x.astype(jnp.bfloat16).astype(jnp.float32)
    wm = module.conv_w.reshape(module.emb_dim, c * p * p).T
    wm = wm.astype(jnp.bfloat16).astype(jnp.float32)

    y = jnp.dot(x, wm, precision=jax.lax.Precision.HIGHEST) + module.conv_b[None, :]
    y = 0.5 * y * (1.0 + jax.lax.erf(y * _SQRT_HALF))
    if module.norm:
        mean = jnp.mean(y, axis=-1, keepdims=True)
        var = jnp.mean((y - mean) ** 2, axis=-1, keepdims=True)
        y = (y - mean) / jnp.sqrt(var + 1e-5)
        y = y * module.ln_gamma + module.ln_beta
    y = y.astype(module.out_dtype).astype(jnp.float32)
    return y.reshape(b, nph * npw, module.emb_dim)


if __name__ == "__main__":
    key = jax.random.PRNGKey(0)
    k_img, k_params = jax.random.split(key)

    # Small shapes consistent with the module's forward.
    B, C, H, W = 2, 4, 16, 16
    PATCH, EMB = 4, 32

    image = jax.random.normal(k_img, (B, C, H, W), dtype=jnp.float32)

    module = ConvPatchEmbedding2dPallas(
        channels=C, patch_size=PATCH, emb_dim=EMB, norm=True, key=k_params)

    out = module(image)
    out = jax.block_until_ready(out)

    ref = jax.block_until_ready(_reference(module, image))
    assert out.shape == (B, (H // PATCH) * (W // PATCH), EMB), out.shape
    out_f32 = out.astype(jnp.float32)
    max_err = float(jnp.max(jnp.abs(out_f32 - ref)))
    # bf16 output quantization bounds the achievable tolerance (~1-2 ulp around |x|<=4).
    assert jnp.allclose(out_f32, ref, atol=3e-2, rtol=3e-2), max_err

    print("KERNEL_OK")
</pallas_src>

<mosaic_0001>
module attributes {stable_mosaic.version = 11 : i64} {
  func.func @_patch_embed_kernel(%arg0: i32, %arg1: memref<16x128xbf16, #tpu.memory_space<vmem>>, %arg2: memref<128x128xbf16, #tpu.memory_space<vmem>>, %arg3: memref<8x128xf32, #tpu.memory_space<vmem>>, %arg4: memref<16x128xbf16, #tpu.memory_space<vmem>>) attributes {dimension_semantics = [#tpu.dimension_semantics<parallel>], iteration_bounds = array<i64: 2>, scalar_prefetch = 0 : i64, scratch_operands = 0 : i64, tpu.core_type = #tpu.core_type<tc>, window_params = [{pipeline_mode = #tpu.pipeline_mode<double_buffered>, transform_indices = @transform_0, window_bounds = array<i64: 16, 128>}, {pipeline_mode = #tpu.pipeline_mode<synchronous>, transform_indices = @transform_1, window_bounds = array<i64: 128, 128>}, {pipeline_mode = #tpu.pipeline_mode<synchronous>, transform_indices = @transform_2, window_bounds = array<i64: 8, 128>}, {transform_indices = @transform_3, window_bounds = array<i64: 16, 128>}]} {
    %c0 = arith.constant 0 : index
    %c0_0 = arith.constant 0 : index
    %0 = vector.load %arg1[%c0, %c0_0] : memref<16x128xbf16, #tpu.memory_space<vmem>>, vector<16x128xbf16>
    %c0_1 = arith.constant 0 : index
    %c0_2 = arith.constant 0 : index
    %1 = vector.load %arg2[%c0_1, %c0_2] : memref<128x128xbf16, #tpu.memory_space<vmem>>, vector<128x128xbf16>
    %c0_3 = arith.constant 0 : index
    %c0_4 = arith.constant 0 : index
    %2 = vector.load %arg3[%c0_3, %c0_4] : memref<8x128xf32, #tpu.memory_space<vmem>>, vector<1x128xf32>
    %cst = arith.constant dense<0.000000e+00> : vector<16x128xf32>
    %3 = tpu.matmul %0, %1, %cst {dimension_numbers = #tpu.dot_dimension_numbers<[1], [0], [0], [1], [0, 0, 1, 1], [], []>} : vector<16x128xbf16>, vector<128x128xbf16>, vector<16x128xf32> -> vector<16x128xf32>
    %4 = vector.broadcast %2 : vector<1x128xf32> to vector<16x128xf32>
    %5 = arith.addf %3, %4 : vector<16x128xf32>
    %cst_5 = arith.constant 5.000000e-01 : f32
    %6 = vector.broadcast %cst_5 : f32 to vector<16x128xf32>
    %7 = arith.mulf %6, %5 : vector<16x128xf32>
    %cst_6 = arith.constant 0.707106769 : f32
    %8 = vector.broadcast %cst_6 : f32 to vector<16x128xf32>
    %9 = arith.mulf %5, %8 : vector<16x128xf32>
    %10 = math.erf %9 : vector<16x128xf32>
    %cst_7 = arith.constant 1.000000e+00 : f32
    %11 = vector.broadcast %cst_7 : f32 to vector<16x128xf32>
    %12 = arith.addf %11, %10 : vector<16x128xf32>
    %13 = arith.mulf %7, %12 : vector<16x128xf32>
    %c1 = arith.constant 1 : index
    %c0_8 = arith.constant 0 : index
    %14 = vector.load %arg3[%c1, %c0_8] : memref<8x128xf32, #tpu.memory_space<vmem>>, vector<1x128xf32>
    %c2 = arith.constant 2 : index
    %c0_9 = arith.constant 0 : index
    %15 = vector.load %arg3[%c2, %c0_9] : memref<8x128xf32, #tpu.memory_space<vmem>>, vector<1x128xf32>
    %cst_10 = arith.constant dense<0.000000e+00> : vector<16xf32>
    %16 = vector.multi_reduction <add>, %13, %cst_10 [1] : vector<16x128xf32> to vector<16xf32>
    %17 = vector.shape_cast %16 : vector<16xf32> to vector<16x1xf32>
    %cst_11 = arith.constant 3.125000e-02 : f32
    %18 = vector.broadcast %cst_11 : f32 to vector<16x1xf32>
    %19 = arith.mulf %17, %18 : vector<16x1xf32>
    %20 = vector.broadcast %19 : vector<16x1xf32> to vector<16x128xf32>
    %21 = arith.subf %13, %20 : vector<16x128xf32>
    %22 = tpu.iota {dimensions = array<i32: 1>} : vector<1x128xi32>
    %c32_i32 = arith.constant 32 : i32
    %23 = vector.broadcast %c32_i32 : i32 to vector<1x128xi32>
    %24 = arith.cmpi slt, %22, %23 : vector<1x128xi32>
    %cst_12 = arith.constant 0.000000e+00 : f32
    %25 = vector.shape_cast %24 : vector<1x128xi1> to vector<1x128xi1>
    %26 = vector.broadcast %25 : vector<1x128xi1> to vector<16x128xi1>
    %27 = vector.broadcast %cst_12 : f32 to vector<16x128xf32>
    %28 = arith.select %26, %21, %27 : vector<16x128xi1>, vector<16x128xf32>
    %29 = arith.mulf %28, %28 : vector<16x128xf32>
    %cst_13 = arith.constant dense<0.000000e+00> : vector<16xf32>
    %30 = vector.multi_reduction <add>, %29, %cst_13 [1] : vector<16x128xf32> to vector<16xf32>
    %31 = vector.shape_cast %30 : vector<16xf32> to vector<16x1xf32>
    %cst_14 = arith.constant 3.125000e-02 : f32
    %32 = vector.broadcast %cst_14 : f32 to vector<16x1xf32>
    %33 = arith.mulf %31, %32 : vector<16x1xf32>
    %cst_15 = arith.constant 9.99999974E-6 : f32
    %34 = vector.broadcast %cst_15 : f32 to vector<16x1xf32>
    %35 = arith.addf %33, %34 : vector<16x1xf32>
    %36 = math.rsqrt %35 : vector<16x1xf32>
    %37 = vector.broadcast %36 : vector<16x1xf32> to vector<16x128xf32>
    %38 = arith.mulf %28, %37 : vector<16x128xf32>
    %39 = vector.broadcast %14 : vector<1x128xf32> to vector<16x128xf32>
    %40 = arith.mulf %38, %39 : vector<16x128xf32>
    %41 = vector.broadcast %15 : vector<1x128xf32> to vector<16x128xf32>
    %42 = arith.addf %40, %41 : vector<16x128xf32>
    %43 = arith.truncf %42 : vector<16x128xf32> to vector<16x128xbf16>
    %c0_16 = arith.constant 0 : index
    %c0_17 = arith.constant 0 : index
    %44 = vector.load %arg4[%c0_16, %c0_17] : memref<16x128xbf16, #tpu.memory_space<vmem>>, vector<16x128xbf16>
    tpu.vector_store %arg4[%c0_16, %c0_17], %43 {strides = array<i32>} : memref<16x128xbf16, #tpu.memory_space<vmem>>, vector<16x128xbf16>,
    return
  }
  func.func @transform_0(%arg0: i32) -> (i32, i32) {
    %c0_i32 = arith.constant 0 : i32
    %c0_i32_0 = arith.constant 0 : i32
    return %arg0, %c0_i32 : i32, i32
  }
  func.func @transform_1(%arg0: i32) -> (i32, i32) {
    %c0_i32 = arith.constant 0 : i32
    %c0_i32_0 = arith.constant 0 : i32
    %c0_i32_1 = arith.constant 0 : i32
    return %c0_i32, %c0_i32_0 : i32, i32
  }
  func.func @transform_2(%arg0: i32) -> (i32, i32) {
    %c0_i32 = arith.constant 0 : i32
    %c0_i32_0 = arith.constant 0 : i32
    %c0_i32_1 = arith.constant 0 : i32
    return %c0_i32, %c0_i32_0 : i32, i32
  }
  func.func @transform_3(%arg0: i32) -> (i32, i32) {
    %c0_i32 = arith.constant 0 : i32
    %c0_i32_0 = arith.constant 0 : i32
    return %arg0, %c0_i32 : i32, i32
  }
}

</mosaic_0001>

<bundles_post_ra>
// kernel: _forward_impl.1
= control target key start
LH: loop header
LB: loop body
LE: loop exit
PB: predicated region body
PF: predicated region fallthrough
CT: control target
= control target key end

     0   :  { %8 = vsyncpa [#allocation3], 0  ;;  %s818_s0 = inlined_call_operand.vmem [shape: bf16[32,128], index: 0, kind: input, shape index: {}]   ;;  %s819_s1 = inlined_call_operand.vmem [shape: bf16[128,128], index: 1, kind: input, shape index: {}]   ;;  %s820_s2 = inlined_call_operand.vmem [shape: f32[8,128], index: 2, kind: input, shape index: {}]   ;;  %s821_s3 = inlined_call_operand.hbm [shape: bf16[32,128], index: 3, kind: output, shape index: {}]  }
   0x1   :  { %10 = vsyncpa [#allocation3 + $0x1], 0  ;;  %s688_s12 = smov 0   ;;  %s690_s13 = smov 0  }
   0x2   :  { %s692_s14 = smov 0   ;;  %s694_s15 = smov 0  }
   0x3 LB: > { %s709_s16 = sadd.s32 4294967295, %s664_s15   ;;  %s485_s17 = sadd.s32 4294967294, %s664_s15   ;;  %s664_s15 = sphi %s694_s15, %s827_s15   ;;  %s660_s14 = sphi %s692_s14, %s826_s14   ;;  %s656_s13 = sphi %s690_s13, %s825_s13   ;;  %s652_s12 = sphi %s688_s12, %s824_s12  }
   0x4   : > { %s713_s18 = sadd.s32 1, %s664_s15   ;;  %s91_s19 = sadd.s32 1, %s660_s14 }
   0x5   : > { %s88_s20 = ssub.s32 %s664_s15, %s713_s18  ;;  %p101_p0 = scmp.ne.s32.totalorder %s660_s14, %s656_s13 }
   0x6   : > { %p89_p1 = scmp.eq.s32.totalorder %s88_s20, 0  ;;  %p102_p2 = scmp.eq.s32.totalorder %s709_s16, 1 }
   0x7   : > { %p107_p3 = scmp.ne.s32.totalorder %s656_s13, %s652_s12  ;;  %p108_p4 = scmp.eq.s32.totalorder %s485_s17, 1 }
   0x8   : > { %s724_s21 = scalar_select %p89_p1, %s660_s14, %s91_s19  }
   0x9   : > { %p726_p5 = por %p102_p2, %p101_p0  ;;  %p730_p6 = por %p108_p4, %p107_p3 }
   0xa   : > { %p488_p7 = scmp.ge.s32.totalorder %s664_s15, 1  ;;  %p141_p8 = scmp.lt.s32.totalorder %s664_s15, 3 }
   0xc   : > { %p142_p9 = pnand %p488_p7, %p141_p8 }
   0xd   : > { %s490_s5 = sshll.u32 (!%p142_p9), %s709_s16, 1  ;;  %s162_s29 = sand.u32 (!%p142_p9), 1, %s656_s13  }
   0xe   : > { %145 = sbr.rel (%p142_p9) target bundleno = 511 (0x1ff), region = 32  ;;  %p166_p10 = scmp.lt.s32.totalorder (!%p142_p9), %s490_s5, 3 }
   0xf   : > { %s544_s6 = sshll.u32 (!%p142_p9), %s709_s16, 3  ;;  %s408_s16 = scalar_lea.sflag (!%p142_p9), [#allocation3], %s162_s29 }
  0x10   : > { %s419_s9 = scalar_lea.hbm (!%p142_p9), %s821_s3, %s544_s6  ;;  %s622_s28 = scalar_lea.hbm (!%p142_p9), %s821_s3, 16 }
  0x11   : > { %s422_s20 = sshll.u32 (!%p142_p9), %s419_s9, 4  ;;  %s423_s20 = int_to_ptr.hbm [resolvable:$true] %s422_s20 }
  0x12   : > { %s616_s24 = sshra.s32 (!%p142_p9), %s423_s20, 4  ;;  %s617_s24 = int_to_ptr.hbm [resolvable:$true] %s616_s24 }
  0x13   : > { %v543_v0 = vld [vmem:[%s819_s1 + $0x38] sm:$0xff]  ;;  %v542_v1 = vld [vmem:[%s819_s1 + $0x30] sm:$0xff]  ;;  %v541_v2 = vld [vmem:[%s819_s1 + $0x28] sm:$0xff]  ;;  %s829_s5 = smov (!%p166_p10, %s490_s5), 3  ;;  %s618_s25 = scalar_lea.hbm %s617_s24, 8 }
  0x14   : > { %246 = vmatpush.bf16.msra.mxu0 %v543_v0  ;;  %v540_v3 = vld [vmem:[%s819_s1 + $0x20] sm:$0xff]  ;;  %v539_v4 = vld [vmem:[%s819_s1 + $0x18] sm:$0xff]  ;;  %v538_v5 = vld [vmem:[%s819_s1 + $0x10] sm:$0xff]  ;;  %s491_s17 = sshll.u32 %s829_s5, 2  ;;  %s489_s5 = sshll.u32 %s162_s29, 3 }
  0x15   : > { %v537_v6 = vld [vmem:[%s819_s1 + $0x8] sm:$0xff]  ;;  %v536_v7 = vld [vmem:[%s819_s1] sm:$0xff]  ;;  %s169_s26 = scalar_lea.vmem %s818_s0, %s491_s17  ;;  %s164_s17 = scalar_lea.vmem [#allocation2], %s489_s5 }
  0x16   : > { %v535_v8 = vld [vmem:[%s169_s26] sm:$0xff]  ;;  %s420_s19 = sshll.u32 %s164_s17, 4  ;;  %p619_p11 = scmp.ne.s32.totalorder %s617_s24, %s618_s25  ;;  %s421_s19 = int_to_ptr.vmem [resolvable:$true] %s420_s19 }
  0x17   : > { %v591_v9 = vld [vmem:[%s820_s2] ss:$0 sm:$0xff]  ;;  %p623_p0 = scmp.lt.s32.totalorder %s617_s24, %s821_s3  ;;  %p624_p1 = scmp.lt.s32.totalorder %s622_s28, %s618_s25 }
  0x18   : > { %247 = vmatpush.bf16.msra.mxu0 %v542_v1  ;;  %p620_p12 = pnand %p619_p11, %p726_p5 }
  0x19   : > { %p625_p2 = por %p624_p1, %p623_p0 }
  0x1a   : > { %p621_p13 = pneg %p620_p12 }
  0x1c   : > { %248 = vmatpush.bf16.msra.mxu0 %v541_v2  ;;  %p626_p3 = pnand %p625_p2, %p621_p13 }
  0x20   : > { %249 = vmatpush.bf16.msra.mxu0 %v540_v3 }
  0x24   : > { %250 = vmatpush.bf16.msra.mxu0 %v539_v4 }
  0x28   : > { %251 = vmatpush.bf16.msra.mxu0 %v538_v5 }
  0x2c   : > { %252 = vmatpush.bf16.msra.mxu0 %v537_v6 }
  0x30   : > { %253 = vmatpush.bf16.msra.mxu0 %v536_v7 }
  0x33   : > { %254 = vmatmul.bf16.vlgmr.msra.gmra.mxu0 %v535_v8 }
  0xb0   : > { %v255_v10 = vpop.f32.mrf.mxu0 }
  0xb1   : > { %v767_v11 = vadd.f32 %v591_v9, %v255_v10 }
  0xb3   : > { %v262_v12 = vmul.f32 0.70710677, %v767_v11 }
  0xb5   : > { %v264_v13 = vmul.f32 %v262_v12, %v262_v12 }
  0xb7   : > { %v265_v14 = vmin.f32 %v264_v13, 16.0 }
  0xb8   : > { %v257_v15 = vpop.f32.mrf.mxu0 }
  0xb9   : > { %v266_v16 = vmul.f32 2.1237322e-06, %v265_v14  ;;  %v770_v17 = vadd.f32 %v591_v9, %v257_v15  ;;  %v277_v18 = vmul.f32 3.8918573e-05, %v265_v14 }
  0xbb   : > { %v267_v19 = vadd.f32 0.00028619796, %v266_v16  ;;  %v773_v20 = vmul.f32 0.70710677, %v770_v17  ;;  %v278_v21 = vadd.f32 0.001143296, %v277_v18 }
  0xbd   : > { %v268_v22 = vmul.f32 %v267_v19, %v265_v14  ;;  %v304_v23 = vmul.f32 %v773_v20, %v773_v20  ;;  %v279_v24 = vmul.f32 %v278_v21, %v265_v14  ;;  %v260_v19 = vmul.f32 0.5, %v767_v11 }
  0xbf   : > { %v305_v25 = vmin.f32 %v304_v23, 16.0  ;;  %v280_v26 = vadd.f32 0.014752088, %v279_v24  ;;  %v269_v27 = vadd.f32 0.0036580483, %v268_v22 }
  0xc1   : > { %v306_v28 = vmul.f32 2.1237322e-06, %v305_v25  ;;  %v317_v29 = vmul.f32 3.8918573e-05, %v305_v25  ;;  %v281_v30 = vmul.f32 %v280_v26, %v265_v14  ;;  %v270_v34 = vmul.f32 %v269_v27, %v265_v14 }
  0xc3   : > { %v307_v31 = vadd.f32 0.00028619796, %v306_v28  ;;  %v318_v32 = vadd.f32 0.001143296, %v317_v29  ;;  %v282_v33 = vadd.f32 0.112945676, %v281_v30 }
  0xc4   : > { %v271_v41 = vadd.f32 0.05243302, %v270_v34  ;;  %v261_v28 = vmul.f32 0.5, %v770_v17 }
  0xc5   : > { %v308_v35 = vmul.f32 %v307_v31, %v305_v25  ;;  %v319_v36 = vmul.f32 %v318_v32, %v305_v25  ;;  %v283_v37 = vmul.f32 %v282_v33, %v265_v14  ;;  %v358_v31 = vlaneseq }
  0xc6   : > { %v272_v47 = vmul.f32 %v271_v41, %v265_v14 }
  0xc7   : > { %v320_v38 = vadd.f32 0.014752088, %v319_v36  ;;  %v309_v39 = vadd.f32 0.0036580483, %v308_v35  ;;  %v284_v40 = vadd.f32 0.4994258, %v283_v37 }
  0xc8   : > { %v273_v51 = vadd.f32 0.18741608, %v272_v47  ;;  %v359_v32 = vand.u32 127, %v358_v31 }
  0xc9   : > { %v321_v42 = vmul.f32 %v320_v38, %v305_v25  ;;  %v285_v43 = vmul.f32 %v284_v40, %v265_v14  ;;  %v310_v45 = vmul.f32 %v309_v39, %v305_v25 }
  0xca   : > { %v274_v56 = vmul.f32 %v273_v51, %v265_v14  ;;  %vm360_vm8 = vcmp.lt.s32.totalorder %v359_v32, 32 }
  0xcb   : > { %v322_v44 = vadd.f32 0.112945676, %v321_v42  ;;  %v286_v46 = vadd.f32 1.0, %v285_v43  ;;  %v311_v50 = vadd.f32 0.05243302, %v310_v45 }
  0xcc   : > { %v275_v61 = vadd.f32 1.1283791, %v274_v56 }
  0xcd   : > { %v323_v48 = vmul.f32 %v322_v44, %v305_v25  ;;  %594 = vrcp.f32 %v286_v46  ;;  %v312_v55 = vmul.f32 %v311_v50, %v305_v25  ;;  %v298_v60 = vand.u32 2147483648, %v286_v46 }
  0xce   : > { %v296_v63 = vand.u32 2147483647, %v286_v46  ;;  %vm292_vm1 = vweird.f32 %v286_v46  ;;  %v276_v5 = vmul.f32 %v275_v61, %v262_v12 }
  0xcf   : > { %v324_v49 = vadd.f32 0.4994258, %v323_v48  ;;  %v313_v59 = vadd.f32 0.18741608, %v312_v55  ;;  %v299_v3 = vor.u32 1.1754944e-38, %v298_v60 }
  0xd0   : > { %vm297_vm3 = vcmp.eq.f32.partialorder %v296_v63, 8.507059e+37 }
  0xd1   : > { %v325_v52 = vmul.f32 %v324_v49, %v305_v25  ;;  %v314_v2 = vmul.f32 %v313_v59, %v305_v25 }
  0xd3   : > { %v326_v53 = vadd.f32 1.0, %v325_v52  ;;  %v595_v54 = vpop.eup %594  ;;  %v315_v13 = vadd.f32 1.1283791, %v314_v2 }
  0xd4   : > { %v288_v57 = vmul.f32 %v595_v54, %v286_v46  ;;  %vm293_vm0 = vweird.f32 %v595_v54 }
  0xd5   : > { %596 = vrcp.f32 %v326_v53  ;;  %vm294_vm2 = vmor %vm292_vm1, %vm293_vm0  ;;  %v338_v10 = vand.u32 2147483648, %v326_v53  ;;  %v336_v15 = vand.u32 2147483647, %v326_v53  ;;  %vm332_vm5 = vweird.f32 %v326_v53 }
  0xd6   : > { %v289_v58 = vsub.f32 1.0, %v288_v57  ;;  %v316_v12 = vmul.f32 %v315_v13, %v773_v20 }
  0xd7   : > { %v339_v22 = vor.u32 1.1754944e-38, %v338_v10  ;;  %vm337_vm7 = vcmp.eq.f32.partialorder %v336_v15, 8.507059e+37 }
  0xd8   : > { %v290_v62 = vmul.f32 %v595_v54, %v289_v58  ;;  %v592_v58 = vld [vmem:[%s820_s2 + $0x1] ss:$0 sm:$0xff] }
  0xda   : > { %v291_v1 = vadd.f32 %v595_v54, %v290_v62 }
  0xdb   : > { %v597_v0 = vpop.eup %596 }
  0xdc   : > { %v328_v4 = vmul.f32 %v597_v0, %v326_v53  ;;  %v295_v6 = vsel %vm294_vm2, %v595_v54, %v291_v1  ;;  %vm333_vm4 = vweird.f32 %v597_v0 }
  0xdd   : > { %v300_v7 = vsel %vm297_vm3, %v299_v3, %v295_v6  ;;  %vm334_vm6 = vmor %vm332_vm5, %vm333_vm4 }
  0xde   : > { %v329_v8 = vsub.f32 1.0, %v328_v4  ;;  %v301_v9 = vmul.f32 %v300_v7, %v276_v5 }
  0xe0   : > { %v330_v14 = vmul.f32 %v597_v0, %v329_v8  ;;  %v528_v16 = vclamps-f32 %v301_v9, 1.0 }
  0xe2   : > { %v331_v18 = vadd.f32 %v597_v0, %v330_v14  ;;  %v344_v21 = vadd.f32 1.0, %v528_v16 }
  0xe4   : > { %v335_v23 = vsel %vm334_vm6, %v597_v0, %v331_v18  ;;  %v346_v24 = vmul.f32 %v344_v21, %v260_v19  ;;  %v593_v0 = vld [vmem:[%s820_s2 + $0x2] ss:$0 sm:$0xff] }
  0xe5   : > { %v340_v25 = vsel %vm337_vm7, %v339_v22, %v335_v23 }
  0xe6   : > { %v341_v26 = vmul.f32 %v340_v25, %v316_v12  ;;  %350 = vadd.xlane.f32.xlu0 %v346_v24 }
  0xe8   : > { %v529_v27 = vclamps-f32 %v341_v26, 1.0 }
  0xea   : > { %v345_v29 = vadd.f32 1.0, %v529_v27 }
  0xec   : > { %v347_v30 = vmul.f32 %v345_v29, %v261_v28 }
  0xee   : > { %352 = vadd.xlane.f32.xlu0 %v347_v30 }
 0x159   : > { %v351_v11 = vpop.xlane.xlu0 %350 }
 0x15a   : > { %v354_v33 = vmul.f32 0.03125, %v351_v11 }
 0x15c   : > { %v356_v34 = vsub.f32 %v346_v24, %v354_v33 }
 0x15e   : > { %v363_v35 = vsel %vm360_vm8, %v356_v34, 0.0 }
 0x15f   : > { %v365_v20 = vmul.f32 %v363_v35, %v363_v35 }
 0x161   : > { %367 = vadd.xlane.f32.xlu1 %v365_v20  ;;  %v353_v36 = vpop.xlane.xlu0 %352 }
 0x162   : > { %v355_v37 = vmul.f32 0.03125, %v353_v36 }
 0x164   : > { %v357_v38 = vsub.f32 %v347_v30, %v355_v37 }
 0x166   : > { %v364_v39 = vsel %vm360_vm8, %v357_v38, 0.0 }
 0x167   : > { %v366_v40 = vmul.f32 %v364_v39, %v364_v39 }
 0x169   : > { %369 = vadd.xlane.f32.xlu1 %v366_v40 }
 0x1d4   : > { %v368_v41 = vpop.xlane.xlu1 %367 }
 0x1d5   : > { %v371_v17 = vmul.f32 0.03125, %v368_v41 }
 0x1d7   : > { %v373_v42 = vadd.f32 1e-05, %v371_v17 }
 0x1d9   : > { %598 = vrsqrt.f32 %v373_v42  ;;  %vm381_vm10 = vweird.f32 %v373_v42 }
 0x1dc   : > { %v370_v43 = vpop.xlane.xlu1 %369 }
 0x1dd   : > { %v372_v44 = vmul.f32 0.03125, %v370_v43 }
 0x1df   : > { %v599_v45 = vpop.eup %598  ;;  %v374_v46 = vadd.f32 1e-05, %v372_v44 }
 0x1e0   : > { %v376_v47 = vmul.f32 %v599_v45, %v373_v42  ;;  %vm382_vm9 = vweird.f32 %v599_v45 }
 0x1e1   : > { %600 = vrsqrt.f32 %v374_v46  ;;  %vm383_vm11 = vmor %vm381_vm10, %vm382_vm9  ;;  %vm391_vm13 = vweird.f32 %v374_v46 }
 0x1e2   : > { %v377_v48 = vmul.f32 %v599_v45, %v376_v47 }
 0x1e4   : > { %v378_v49 = vmul.f32 0.5, %v377_v48 }
 0x1e6   : > { %v379_v50 = vsub.f32 1.5, %v378_v49 }
 0x1e7   : > { %v601_v51 = vpop.eup %600 }
 0x1e8   : > { %v380_v52 = vmul.f32 %v599_v45, %v379_v50  ;;  %v386_v53 = vmul.f32 %v601_v51, %v374_v46  ;;  %vm392_vm12 = vweird.f32 %v601_v51 }
 0x1e9   : > { %vm393_vm14 = vmor %vm391_vm13, %vm392_vm12 }
 0x1ea   : > { %v387_v54 = vmul.f32 %v601_v51, %v386_v53  ;;  %v384_v55 = vsel %vm383_vm11, %v599_v45, %v380_v52 }
 0x1eb   : > { %v395_v59 = vmul.f32 %v384_v55, %v363_v35 }
 0x1ec   : > { %v388_v56 = vmul.f32 0.5, %v387_v54 }
 0x1ed   : > { %v398_v62 = vmul.f32 %v592_v58, %v395_v59 }
 0x1ee   : > { %v389_v57 = vsub.f32 1.5, %v388_v56 }
 0x1ef   : > { %v401_v2 = vadd.f32 %v593_v0, %v398_v62 }
 0x1f0   : > { %v390_v60 = vmul.f32 %v601_v51, %v389_v57 }
 0x1f2   : > { %v394_v61 = vsel %vm393_vm14, %v601_v51, %v390_v60 }
 0x1f3   : > { %v396_v63 = vmul.f32 %v394_v61, %v364_v39 }
 0x1f5   : > { %v399_v1 = vmul.f32 %v592_v58, %v396_v63 }
 0x1f7   : > { %v402_v3 = vadd.f32 %v593_v0, %v399_v1 }
 0x1f9   : > { %v548_v4 = vpack.c.bf16 %v402_v3, %v401_v2 }
 0x1fb   : > { %549 = vst [vmem:[%s164_s17] sm:$0xff] %v548_v4  }
 0x1fc   : > { %629 = shalt.err (!%p626_p3)
}
 0x1fd   : > { %s666_s29 = smov 64   ;;  %s667_s5 = smov 4  }
 0x1fe   : > { %550 = dma.vmem_to_hbm [thread:$0]  (%p726_p5), %s421_s19, 128, %s423_s20, %s408_s16, %s666_s29, %s666_s29, %s667_s5  }
 0x1ff PF: > { %p556_p4 = scmp.ge.s32.totalorder %s664_s15, 2  ;;  %s437_s6 = sand.u32 1, %s652_s12  }
 0x200   : > { %s438_s7 = scalar_lea.sflag [#allocation3], %s437_s6 }
 0x201   : > { %p553_p7 = pnand %p556_p4, %p730_p6 }
 0x203   : > { %p554_p8 = pneg %p553_p7 }
 0x205   : > { %647 = dma.done.wait (%p554_p8), %s438_s7, 128  }
 0x206   : > { %649 = vsyncadd (%p554_p8), %s438_s7, 4294967168  ;;  %p13_p9 = scmp.ge.s32.totalorder %s713_s18, 4   ;;  %s824_s12 = smov %s656_s13 }
 0x207   : > { %s825_s13 = smov %s660_s14  ;;  %s826_s14 = smov %s724_s21 }
 0x208   : > { %s827_s15 = smov %s713_s18  ;;  %15 = sbr.rel (!%p13_p9) target bundleno = 3 (0x3), region = 67 }
 0x20d   :  { %444 = vsyncpa [#allocation3], 1 }
 0x20e   :  { %446 = vsyncpa [#allocation3 + $0x1], 1 }

</bundles_post_ra>
